<compile_context>
chip_gen: v6e
topology: v6e:2x2x1
jax: 0.10.0
libtpu: 0.0.40
codegen_flags: <defaults>
</compile_context>

<pallas_src>
import functools

import jax
import jax.numpy as jnp
from jax.experimental import pallas as pl
from jax.experimental.pallas import tpu as pltpu


def _df_kernel(t_ref, x_ref, w_ref, b_ref, dx_ref, dr_ref, im2col_ref, *, W):
    # t_ref      : SMEM (1, 1)         scalar time
    # x_ref      : VMEM (bb, C, H*W)   NCHW-flat input block (bb samples)
    # w_ref      : VMEM (C, 9*C)       conv weights, (C_out, kh*kw*C_in)
    # b_ref      : VMEM (C, 1)         conv bias
    # dx_ref     : VMEM (bb, C, H*W)   df(t, x)  (lane-dense, NCHW order)
    # dr_ref     : VMEM (bb, 1, 1)     recf output 0.5 * ||dx||^2
    # im2col_ref : VMEM (9*C, H*W)     scratch for the im2col operand
    bb, C, N = x_ref.shape
    t = t_ref[0, 0]
    wmat = w_ref[...]                         # (C, 9C), resident
    bt = b_ref[...] + t                       # fused bias + t, (C, 1)

    # Width-position masks (zero the columns that would wrap across rows).
    wpos = jax.lax.broadcasted_iota(jnp.int32, (C, N), 1) % W
    not_first_col = wpos != 0                 # source for dw == +1 taps
    not_last_col = wpos != (W - 1)            # source for dw == -1 taps

    # Edge columns of the im2col scratch stay zero (out-of-image halo taps).
    im2col_ref[...] = jnp.zeros((9 * C, N), jnp.float32)

    r_list = []
    for b in range(bb):                       # static, unrolled
        xb = x_ref[b]                         # (C, N)
        x_w0 = jnp.where(not_first_col, xb, 0.0)   # w == 0     zeroed
        x_wl = jnp.where(not_last_col, xb, 0.0)    # w == W-1   zeroed
        for kh in range(3):
            dh = kh - 1
            for kw in range(3):
                dw = kw - 1
                src_arr = x_wl if kw == 0 else (x_w0 if kw == 2 else xb)
                s = dh * W + dw               # flat shift of this tap
                length = N - abs(s)
                dst = max(0, -s)
                src = max(0, s)
                k = kh * 3 + kw
                im2col_ref[pl.ds(k * C, C), pl.ds(dst, length)] = (
                    src_arr[:, src:src + length])

        # One MXU matmul: (C, 9C) @ (9C, N) -> (C, N)
        acc = jnp.dot(wmat, im2col_ref[...],
                      preferred_element_type=jnp.float32)
        dx = jnp.tanh(acc + bt)               # df(t,x) = tanh(conv(x)+b+t)
        dx_ref[b] = dx.astype(dx_ref.dtype)

        # recf: kinetic-energy regularizer (lane reduce -> sublane reduce).
        r = jnp.sum(dx * dx, axis=1, keepdims=True)   # (C, 1)
        r = jnp.sum(r, axis=0, keepdims=True)         # (1, 1)
        r_list.append(r)

    dr = r_list[0] if bb == 1 else jnp.concatenate(r_list, axis=0)
    dr_ref[...] = (0.5 * dr).reshape(bb, 1, 1)


@functools.partial(jax.jit, static_argnames=("shape", "osize"))
def dfwrapper_forward(t, x_flat, w_mat, bias, *, shape, osize=1):
    """Equivalent of dfwrapper.forward(t, x) with recf (osize=1)."""
    C, H, W = shape
    B = x_flat.shape[0]
    N = H * W

    # x[:, :-osize].reshape(B, *shape): NCHW flat order == (B, C, H*W).
    x = x_flat[:, :x_flat.shape[1] - osize].reshape(B, C, N)
    t_arr = jnp.reshape(t, (1, 1)).astype(jnp.float32)
    b2 = bias.reshape(C, 1).astype(jnp.float32)

    # <= 2 grid steps: 2 parallel blocks (v7x megacore) when B is even.
    nb = 2 if (B >= 2 and B % 2 == 0) else 1
    bb = B // nb

    kernel = functools.partial(_df_kernel, W=W)
    dx, dr = pl.pallas_call(
        kernel,
        out_shape=(
            jax.ShapeDtypeStruct((B, C, N), jnp.float32),
            jax.ShapeDtypeStruct((B, 1, 1), jnp.float32),
        ),
        grid_spec=pltpu.PrefetchScalarGridSpec(
            num_scalar_prefetch=0,
            grid=(nb,),
            in_specs=[
                pl.BlockSpec(memory_space=pltpu.MemorySpace.SMEM),   # t
                pl.BlockSpec((bb, C, N), lambda i: (i, 0, 0)),       # x
                pl.BlockSpec((C, 9 * C), lambda i: (0, 0)),          # weights
                pl.BlockSpec((C, 1), lambda i: (0, 0)),              # bias
            ],
            out_specs=[
                pl.BlockSpec((bb, C, N), lambda i: (i, 0, 0)),       # dx
                pl.BlockSpec((bb, 1, 1), lambda i: (i, 0, 0)),       # dr
            ],
            scratch_shapes=[pltpu.VMEM((9 * C, N), jnp.float32)],
        ),
        compiler_params=pltpu.CompilerParams(
            dimension_semantics=("parallel",)),
    )(t_arr, x, w_mat, b2)

    # dx is already flat NCHW per sample; reshape is free, then append recf.
    dx_flat = dx.reshape(B, C * N)
    dr_flat = dr.reshape(B, osize)
    return jnp.concatenate([dx_flat, dr_flat], axis=1)


def _reference_forward(t, x_flat, w_oihw, bias, *, shape, osize=1):
    """Pure-JAX reference for correctness checking (uses OIHW weights)."""
    C, H, W = shape
    B = x_flat.shape[0]
    x = x_flat[:, :x_flat.shape[1] - osize].reshape(B, C, H, W)
    y = jax.lax.conv_general_dilated(
        x, w_oihw, window_strides=(1, 1), padding="SAME",
        dimension_numbers=("NCHW", "OIHW", "NCHW"))
    dx = jnp.tanh(y + bias.reshape(1, C, 1, 1) + t).reshape(B, -1)
    dr = 0.5 * jnp.sum(dx * dx, axis=1, keepdims=True)
    return jnp.concatenate([dx, dr], axis=1)


if __name__ == "__main__":
    B, C, H, W = 2, 4, 16, 16
    osize = 1
    shape = (C, H, W)

    key = jax.random.PRNGKey(0)
    k1, k2, k3 = jax.random.split(key, 3)

    # torch Conv2d(C, C, 3) weight layout: (C_out, C_in, 3, 3)
    w_oihw = jax.random.normal(k1, (C, C, 3, 3), jnp.float32) * 0.1
    bias = jax.random.normal(k2, (C,), jnp.float32) * 0.1
    # Kernel weight layout: (C_out, kh*kw*C_in) matching the im2col row order.
    w_mat = jnp.transpose(w_oihw, (0, 2, 3, 1)).reshape(C, 9 * C)

    # Flat ODE state: conv state + recf state (osize extra columns).
    x_flat = jax.random.normal(k3, (B, C * H * W + osize), jnp.float32)
    t = jnp.float32(0.5)

    out = dfwrapper_forward(t, x_flat, w_mat, bias, shape=shape, osize=osize)
    out = jax.block_until_ready(out)

    assert out.shape == (B, C * H * W + osize), out.shape
    ref = _reference_forward(t, x_flat, w_oihw, bias, shape=shape, osize=osize)
    err = float(jnp.max(jnp.abs(out - ref)))
    assert jnp.allclose(out, ref, atol=2e-4, rtol=2e-4), err

    print("KERNEL_OK")
</pallas_src>

<mosaic_0001>
module attributes {stable_mosaic.version = 11 : i64} {
  func.func @_df_kernel(%arg0: i32, %arg1: memref<1x1xf32, #tpu.memory_space<smem>>, %arg2: memref<1x4x256xf32, #tpu.memory_space<vmem>>, %arg3: memref<4x36xf32, #tpu.memory_space<vmem>>, %arg4: memref<4x1xf32, #tpu.memory_space<vmem>>, %arg5: memref<1x4x256xf32, #tpu.memory_space<vmem>>, %arg6: memref<1x1x1xf32, #tpu.memory_space<vmem>>, %arg7: memref<36x256xf32, #tpu.memory_space<vmem>>) attributes {dimension_semantics = [#tpu.dimension_semantics<parallel>], iteration_bounds = array<i64: 2>, scalar_prefetch = 0 : i64, scratch_operands = 1 : i64, tpu.core_type = #tpu.core_type<tc>, window_params = [{transform_indices = @transform_0, window_bounds = array<i64: 1, 1>}, {transform_indices = @transform_1, window_bounds = array<i64: 1, 4, 256>}, {pipeline_mode = #tpu.pipeline_mode<synchronous>, transform_indices = @transform_2, window_bounds = array<i64: 4, 36>}, {pipeline_mode = #tpu.pipeline_mode<synchronous>, transform_indices = @transform_3, window_bounds = array<i64: 4, 1>}, {transform_indices = @transform_4, window_bounds = array<i64: 1, 4, 256>}, {transform_indices = @transform_5, window_bounds = array<i64: 1, 1, 1>}]} {
    %c0 = arith.constant 0 : index
    %c0_0 = arith.constant 0 : index
    %0 = memref.load %arg1[%c0, %c0_0] : memref<1x1xf32, #tpu.memory_space<smem>>
    %c0_1 = arith.constant 0 : index
    %c0_2 = arith.constant 0 : index
    %1 = vector.load %arg3[%c0_1, %c0_2] : memref<4x36xf32, #tpu.memory_space<vmem>>, vector<4x36xf32>
    %c0_3 = arith.constant 0 : index
    %c0_4 = arith.constant 0 : index
    %2 = vector.load %arg4[%c0_3, %c0_4] : memref<4x1xf32, #tpu.memory_space<vmem>>, vector<4x1xf32>
    %3 = vector.broadcast %0 : f32 to vector<4x1xf32>
    %4 = arith.addf %2, %3 : vector<4x1xf32>
    %5 = tpu.iota {dimensions = array<i32: 1>} : vector<4x256xi32>
    %c16_i32 = arith.constant 16 : i32
    %c0_i32 = arith.constant 0 : i32
    %6 = arith.cmpi eq, %c16_i32, %c0_i32 : i32
    %c1_i32 = arith.constant 1 : i32
    %7 = arith.select %6, %c1_i32, %c16_i32 : i32
    %8 = vector.broadcast %7 : i32 to vector<4x256xi32>
    %9 = arith.remsi %5, %8 : vector<4x256xi32>
    %c0_i32_5 = arith.constant 0 : i32
    %10 = vector.broadcast %c0_i32_5 : i32 to vector<4x256xi32>
    %11 = arith.cmpi ne, %9, %10 : vector<4x256xi32>
    %c0_i32_6 = arith.constant 0 : i32
    %12 = vector.broadcast %c0_i32_6 : i32 to vector<4x256xi32>
    %13 = arith.cmpi slt, %9, %12 : vector<4x256xi32>
    %c0_i32_7 = arith.constant 0 : i32
    %14 = arith.cmpi slt, %7, %c0_i32_7 : i32
    %15 = vector.broadcast %14 : i1 to vector<4x256xi1>
    %16 = vector.broadcast %15 : vector<4x256xi1> to vector<4x256xi1>
    %17 = arith.xori %13, %16 : vector<4x256xi1>
    %18 = arith.andi %17, %11 : vector<4x256xi1>
    %19 = vector.broadcast %7 : i32 to vector<4x256xi32>
    %20 = arith.addi %9, %19 : vector<4x256xi32>
    %21 = arith.select %18, %20, %9 : vector<4x256xi1>, vector<4x256xi32>
    %c0_i32_8 = arith.constant 0 : i32
    %22 = vector.broadcast %c0_i32_8 : i32 to vector<4x256xi32>
    %23 = arith.cmpi ne, %21, %22 : vector<4x256xi32>
    %c15_i32 = arith.constant 15 : i32
    %24 = vector.broadcast %c15_i32 : i32 to vector<4x256xi32>
    %25 = arith.cmpi ne, %21, %24 : vector<4x256xi32>
    %cst = arith.constant 0.000000e+00 : f32
    %26 = vector.broadcast %cst : f32 to vector<36x256xf32>
    %c0_9 = arith.constant 0 : index
    %c0_10 = arith.constant 0 : index
    %27 = vector.load %arg7[%c0_9, %c0_10] : memref<36x256xf32, #tpu.memory_space<vmem>>, vector<36x256xf32>
    tpu.vector_store %arg7[%c0_9, %c0_10], %26 {strides = array<i32>} : memref<36x256xf32, #tpu.memory_space<vmem>>, vector<36x256xf32>,
    %c0_11 = arith.constant 0 : index
    %c0_12 = arith.constant 0 : index
    %c0_13 = arith.constant 0 : index
    %28 = vector.load %arg2[%c0_11, %c0_12, %c0_13] : memref<1x4x256xf32, #tpu.memory_space<vmem>>, vector<1x4x256xf32>
    %29 = vector.shape_cast %28 : vector<1x4x256xf32> to vector<4x256xf32>
    %cst_14 = arith.constant 0.000000e+00 : f32
    %30 = vector.broadcast %cst_14 : f32 to vector<4x256xf32>
    %31 = arith.select %23, %29, %30 : vector<4x256xi1>, vector<4x256xf32>
    %cst_15 = arith.constant 0.000000e+00 : f32
    %32 = vector.broadcast %cst_15 : f32 to vector<4x256xf32>
    %33 = arith.select %25, %29, %32 : vector<4x256xi1>, vector<4x256xf32>
    %34 = vector.extract_strided_slice %33 {offsets = [0, 0], sizes = [4, 239], strides = [1, 1]} : vector<4x256xf32> to vector<4x239xf32>
    %c0_16 = arith.constant 0 : index
    %c17 = arith.constant 17 : index
    %35 = vector.load %arg7[%c0_16, %c17] : memref<36x256xf32, #tpu.memory_space<vmem>>, vector<4x239xf32>
    tpu.vector_store %arg7[%c0_16, %c17], %34 {strides = array<i32>} : memref<36x256xf32, #tpu.memory_space<vmem>>, vector<4x239xf32>,
    %36 = vector.extract_strided_slice %29 {offsets = [0, 0], sizes = [4, 240], strides = [1, 1]} : vector<4x256xf32> to vector<4x240xf32>
    %c4 = arith.constant 4 : index
    %c16 = arith.constant 16 : index
    %37 = vector.load %arg7[%c4, %c16] : memref<36x256xf32, #tpu.memory_space<vmem>>, vector<4x240xf32>
    tpu.vector_store %arg7[%c4, %c16], %36 {strides = array<i32>} : memref<36x256xf32, #tpu.memory_space<vmem>>, vector<4x240xf32>,
    %38 = vector.extract_strided_slice %31 {offsets = [0, 0], sizes = [4, 241], strides = [1, 1]} : vector<4x256xf32> to vector<4x241xf32>
    %c8 = arith.constant 8 : index
    %c15 = arith.constant 15 : index
    %39 = vector.load %arg7[%c8, %c15] : memref<36x256xf32, #tpu.memory_space<vmem>>, vector<4x241xf32>
    tpu.vector_store %arg7[%c8, %c15], %38 {strides = array<i32>} : memref<36x256xf32, #tpu.memory_space<vmem>>, vector<4x241xf32>,
    %40 = vector.extract_strided_slice %33 {offsets = [0, 0], sizes = [4, 255], strides = [1, 1]} : vector<4x256xf32> to vector<4x255xf32>
    %c12 = arith.constant 12 : index
    %c1 = arith.constant 1 : index
    %41 = vector.load %arg7[%c12, %c1] : memref<36x256xf32, #tpu.memory_space<vmem>>, vector<4x255xf32>
    tpu.vector_store %arg7[%c12, %c1], %40 {strides = array<i32>} : memref<36x256xf32, #tpu.memory_space<vmem>>, vector<4x255xf32>,
    %c16_17 = arith.constant 16 : index
    %c0_18 = arith.constant 0 : index
    %42 = vector.load %arg7[%c16_17, %c0_18] : memref<36x256xf32, #tpu.memory_space<vmem>>, vector<4x256xf32>
    tpu.vector_store %arg7[%c16_17, %c0_18], %29 {strides = array<i32>} : memref<36x256xf32, #tpu.memory_space<vmem>>, vector<4x256xf32>,
    %43 = vector.extract_strided_slice %31 {offsets = [0, 1], sizes = [4, 255], strides = [1, 1]} : vector<4x256xf32> to vector<4x255xf32>
    %c20 = arith.constant 20 : index
    %c0_19 = arith.constant 0 : index
    %44 = vector.load %arg7[%c20, %c0_19] : memref<36x256xf32, #tpu.memory_space<vmem>>, vector<4x255xf32>
    tpu.vector_store %arg7[%c20, %c0_19], %43 {strides = array<i32>} : memref<36x256xf32, #tpu.memory_space<vmem>>, vector<4x255xf32>,
    %45 = vector.extract_strided_slice %33 {offsets = [0, 15], sizes = [4, 241], strides = [1, 1]} : vector<4x256xf32> to vector<4x241xf32>
    %c24 = arith.constant 24 : index
    %c0_20 = arith.constant 0 : index
    %46 = vector.load %arg7[%c24, %c0_20] : memref<36x256xf32, #tpu.memory_space<vmem>>, vector<4x241xf32>
    tpu.vector_store %arg7[%c24, %c0_20], %45 {strides = array<i32>} : memref<36x256xf32, #tpu.memory_space<vmem>>, vector<4x241xf32>,
    %47 = vector.extract_strided_slice %29 {offsets = [0, 16], sizes = [4, 240], strides = [1, 1]} : vector<4x256xf32> to vector<4x240xf32>
    %c28 = arith.constant 28 : index
    %c0_21 = arith.constant 0 : index
    %48 = vector.load %arg7[%c28, %c0_21] : memref<36x256xf32, #tpu.memory_space<vmem>>, vector<4x240xf32>
    tpu.vector_store %arg7[%c28, %c0_21], %47 {strides = array<i32>} : memref<36x256xf32, #tpu.memory_space<vmem>>, vector<4x240xf32>,
    %49 = vector.extract_strided_slice %31 {offsets = [0, 17], sizes = [4, 239], strides = [1, 1]} : vector<4x256xf32> to vector<4x239xf32>
    %c32 = arith.constant 32 : index
    %c0_22 = arith.constant 0 : index
    %50 = vector.load %arg7[%c32, %c0_22] : memref<36x256xf32, #tpu.memory_space<vmem>>, vector<4x239xf32>
    tpu.vector_store %arg7[%c32, %c0_22], %49 {strides = array<i32>} : memref<36x256xf32, #tpu.memory_space<vmem>>, vector<4x239xf32>,
    %c0_23 = arith.constant 0 : index
    %c0_24 = arith.constant 0 : index
    %51 = vector.load %arg7[%c0_23, %c0_24] : memref<36x256xf32, #tpu.memory_space<vmem>>, vector<36x256xf32>
    %cst_25 = arith.constant dense<0.000000e+00> : vector<4x256xf32>
    %52 = tpu.matmul %1, %51, %cst_25 {dimension_numbers = #tpu.dot_dimension_numbers<[1], [0], [0], [1], [0, 0, 1, 1], [], []>} : vector<4x36xf32>, vector<36x256xf32>, vector<4x256xf32> -> vector<4x256xf32>
    %53 = vector.broadcast %4 : vector<4x1xf32> to vector<4x256xf32>
    %54 = arith.addf %52, %53 : vector<4x256xf32>
    %55 = math.tanh %54 : vector<4x256xf32>
    %c0_26 = arith.constant 0 : index
    %c0_27 = arith.constant 0 : index
    %c0_28 = arith.constant 0 : index
    %56 = vector.load %arg5[%c0_26, %c0_27, %c0_28] : memref<1x4x256xf32, #tpu.memory_space<vmem>>, vector<1x4x256xf32>
    %57 = vector.shape_cast %56 : vector<1x4x256xf32> to vector<4x256xf32>
    %58 = vector.shape_cast %55 : vector<4x256xf32> to vector<1x4x256xf32>
    tpu.vector_store %arg5[%c0_26, %c0_27, %c0_28], %58 {strides = array<i32>} : memref<1x4x256xf32, #tpu.memory_space<vmem>>, vector<1x4x256xf32>,
    %59 = arith.mulf %55, %55 : vector<4x256xf32>
    %cst_29 = arith.constant dense<0.000000e+00> : vector<4xf32>
    %60 = vector.multi_reduction <add>, %59, %cst_29 [1] : vector<4x256xf32> to vector<4xf32>
    %61 = vector.shape_cast %60 : vector<4xf32> to vector<4x1xf32>
    %cst_30 = arith.constant dense<0.000000e+00> : vector<1xf32>
    %62 = vector.multi_reduction <add>, %61, %cst_30 [0] : vector<4x1xf32> to vector<1xf32>
    %63 = vector.shape_cast %62 : vector<1xf32> to vector<1x1xf32>
    %cst_31 = arith.constant 5.000000e-01 : f32
    %64 = vector.broadcast %cst_31 : f32 to vector<1x1xf32>
    %65 = arith.mulf %64, %63 : vector<1x1xf32>
    %66 = vector.shape_cast %65 : vector<1x1xf32> to vector<1x1x1xf32>
    %c0_32 = arith.constant 0 : index
    %c0_33 = arith.constant 0 : index
    %c0_34 = arith.constant 0 : index
    %67 = vector.load %arg6[%c0_32, %c0_33, %c0_34] : memref<1x1x1xf32, #tpu.memory_space<vmem>>, vector<1x1x1xf32>
    tpu.vector_store %arg6[%c0_32, %c0_33, %c0_34], %66 {strides = array<i32>} : memref<1x1x1xf32, #tpu.memory_space<vmem>>, vector<1x1x1xf32>,
    return
  }
  func.func @transform_0(%arg0: i32) -> (i32, i32) {
    %c0_i32 = arith.constant 0 : i32
    %c0_i32_0 = arith.constant 0 : i32
    %c0_i32_1 = arith.constant 0 : i32
    return %c0_i32, %c0_i32_0 : i32, i32
  }
  func.func @transform_1(%arg0: i32) -> (i32, i32, i32) {
    %c0_i32 = arith.constant 0 : i32
    %c0_i32_0 = arith.constant 0 : i32
    %c0_i32_1 = arith.constant 0 : i32
    return %arg0, %c0_i32, %c0_i32_0 : i32, i32, i32
  }
  func.func @transform_2(%arg0: i32) -> (i32, i32) {
    %c0_i32 = arith.constant 0 : i32
    %c0_i32_0 = arith.constant 0 : i32
    %c0_i32_1 = arith.constant 0 : i32
    return %c0_i32, %c0_i32_0 : i32, i32
  }
  func.func @transform_3(%arg0: i32) -> (i32, i32) {
    %c0_i32 = arith.constant 0 : i32
    %c0_i32_0 = arith.constant 0 : i32
    %c0_i32_1 = arith.constant 0 : i32
    return %c0_i32, %c0_i32_0 : i32, i32
  }
  func.func @transform_4(%arg0: i32) -> (i32, i32, i32) {
    %c0_i32 = arith.constant 0 : i32
    %c0_i32_0 = arith.constant 0 : i32
    %c0_i32_1 = arith.constant 0 : i32
    return %arg0, %c0_i32, %c0_i32_0 : i32, i32, i32
  }
  func.func @transform_5(%arg0: i32) -> (i32, i32, i32) {
    %c0_i32 = arith.constant 0 : i32
    %c0_i32_0 = arith.constant 0 : i32
    %c0_i32_1 = arith.constant 0 : i32
    return %arg0, %c0_i32, %c0_i32_0 : i32, i32, i32
  }
}

</mosaic_0001>

<bundles_post_ra>
// kernel: dfwrapper_forward.1
= control target key start
LH: loop header
LB: loop body
LE: loop exit
PB: predicated region body
PF: predicated region fallthrough
CT: control target
= control target key end

     0   :  { %s681_s20 = smov 0   ;;  %s726_s0 = inlined_call_operand.<no memory space> [shape: f32[1,1], index: 0, kind: input, shape index: {}]   ;;  %s727_s1 = inlined_call_operand.vmem [shape: f32[2,4,256], index: 1, kind: input, shape index: {}]   ;;  %s728_s2 = inlined_call_operand.vmem [shape: f32[4,36], index: 2, kind: input, shape index: {}]   ;;  %s729_s3 = inlined_call_operand.vmem [shape: f32[4,1], index: 3, kind: input, shape index: {}]   ;;  %s730_s4 = inlined_call_operand.vmem [shape: f32[2,4,256], index: 4, kind: output, shape index: {0}]   ;;  %s731_s5 = inlined_call_operand.vmem [shape: f32[2,1,1], index: 5, kind: output, shape index: {1}]  }
   0x1   :  { %11 = sst [smem:[#allocation3]] %s726_s0 }
   0x2 LB: > { %s589_s21 = sadd.s32 4294967295, %s636_s20   ;;  %p593_p0 = scmp.ge.s32.totalorder %s636_s20, 1  ;;  %s636_s20 = sphi %s681_s20, %s17_s20  }
   0x3   : > { %p191_p1 = scmp.lt.s32.totalorder %s636_s20, 3 }
   0x5   : > { %p192_p2 = pnand %p593_p0, %p191_p1 }
   0x6   : > { %p689_p3 = scmp.lt.s32.totalorder (!%p192_p2), %s589_s21, 1  ;;  %s639_s26 = smov (!%p192_p2), 112  }
   0x7   : > { %195 = sbr.rel (%p192_p2) target bundleno = 544 (0x220), region = 36  ;;  %s640_s27 = smov (!%p192_p2), 111  }
   0x8   : > { %s641_s28 = smov (!%p192_p2), 113   ;;  %s642_s29 = smov (!%p192_p2), 127  }
   0x9   : > { %s643_s30 = smov (!%p192_p2), 15   ;;  %s644_s6 = smov (!%p192_p2), 1  }
   0xa   : > { %s645_s7 = smov (!%p192_p2), 17   ;;  %s235_s8 = sld [smem:[#allocation3]] (!%p192_p2) }
   0xb   : > { %s646_s9 = smov (!%p192_p2), 16  }
   0xc   : > { %v240_v0 = vlaneseq  ;;  %v638_v1 = vmov 0.0   ;;  %s734_s21 = smov (!%p689_p3, %s589_s21), 1  ;;  %v647_v17 = vmov 0   ;;  %v237_v18 = vld [vmem:[%s729_s3] sm:$0xf]  ;;  %vm375_vm4 = vcmask 916484  }
   0xd   : > { %278 = vst [vmem:[#allocation2 + $0x38] sm:$0xff] %v638_v1  ;;  %271 = vst [vmem:[#allocation2] sm:$0xff] %v638_v1  ;;  %478 = vmatprep.mubr.f32.mxu0 %v638_v1  ;;  %s603_s0 = sshll.u32 %s734_s21, 3  ;;  %623 = vset.pattern.permute.xlu0 %v647_v17  ;;  %vm370_vm5 = vcmask 916480   ;;  %vm359_vm6 = vcmask 924672   ;;  %vm364_vm7 = vcmask 920576   ;;  %s234_s19 = scalar_lea.vmem %s731_s5, %s734_s21 }
   0xe   : > { %272 = vst [vmem:[#allocation2 + $0x8] sm:$0xff] %v638_v1  ;;  %273 = vst [vmem:[#allocation2 + $0x10] sm:$0xff] %v638_v1  ;;  %v241_v2 = vand.u32 127, %v240_v0  ;;  %s226_s25 = scalar_lea.vmem %s727_s1, %s603_s0  ;;  %vm381_vm8 = vcmask 908288   ;;  %vm386_vm9 = vcmask 904192   ;;  %vm353_vm10 = vcmask 1039364   ;;  %s231_s16 = scalar_lea.vmem %s730_s4, %s603_s0 }
   0xf   : > { %274 = vst [vmem:[#allocation2 + $0x18] sm:$0xff] %v638_v1  ;;  %275 = vst [vmem:[#allocation2 + $0x20] sm:$0xff] %v638_v1  ;;  %v281_v5 = vld [vmem:[%s226_s25] sm:$0xff]  ;;  %vm348_vm11 = vcmask 1039360   ;;  %vm324_vm12 = vcmask 1043576   ;;  %vm320_vm13 = vcmask 121856  }
  0x10   : > { %276 = vst [vmem:[#allocation2 + $0x28] sm:$0xff] %v638_v1  ;;  %277 = vst [vmem:[#allocation2 + $0x30] sm:$0xff] %v638_v1  ;;  %v247_v3 = vand.u32 15, %v241_v2  ;;  %v242_v4 = vadd.s32 128, %v241_v2  ;;  %368 = vrot.lane.b32.xlu1 %v281_v5, %s639_s26  ;;  %v283_v8 = vcombine.high %v281_v5, %v281_v5  ;;  %v302_v10 = vcombine.low %v281_v5, %v281_v5  ;;  %v236_v54 = vld [vmem:[%s728_s2] sm:$0xf] }
  0x11   : > { %279 = vst [vmem:[#allocation2 + $0x40] sm:$0xf] %v638_v1  ;;  %280 = vst [vmem:[#allocation2 + $0x48] sm:$0xf] %v638_v1  ;;  %v238_v19 = vstv %s235_s8  ;;  %vm407_vm14 = vcmask 1043456   ;;  %vm337_vm15 = vcmask 1047564  }
  0x12   : > { %vm267_vm0 = vcmp.ne.s32.totalorder %v247_v3, 0  ;;  %vm269_vm1 = vcmp.ne.s32.totalorder %v247_v3, 15  ;;  %v254_v6 = vand.u32 15, %v242_v4  ;;  %340 = vst [vmem:[#allocation2 + $0x20] sm:$0xf] %v281_v5  ;;  %v239_v20 = vadd.f32 %v238_v19, %v237_v18 }
  0x13   : > { %v285_v7 = vsel %vm267_vm0, %v281_v5, 0.0  ;;  %v287_v9 = vsel %vm269_vm1, %v281_v5, 0.0  ;;  %341 = vst [vmem:[#allocation2 + $0x28] sm:$0xf] %v283_v8  ;;  %vm333_vm0 = vcmask 7168   ;;  %vm299_vm1 = vcmask 1043592  }
  0x14   : > { %377 = vrot.lane.b32.xlu0 %v285_v7, %s640_s27  ;;  %vm270_vm2 = vcmp.ne.s32.totalorder %v254_v6, 15  ;;  %vm268_vm3 = vcmp.ne.s32.totalorder %v254_v6, 0  ;;  %355 = vrot.lane.b32.xlu1 %v287_v9, %s641_s28  ;;  %v342_v14 = vrot.slane %v285_v7, 4  ;;  %v327_v16 = vrot.slane %v287_v9, 4 }
  0x15   : > { %v288_v11 = vsel %vm270_vm2, %v283_v8, 0.0  ;;  %v286_v12 = vsel %vm268_vm3, %v283_v8, 0.0  ;;  %vm295_vm2 = vcmask 138240   ;;  %vm311_vm3 = vcmask 1047684  }
  0x16   : > { %v343_v13 = vrot.slane %v286_v12, 4  ;;  %v328_v15 = vrot.slane %v288_v11, 4 }
  0x18   : > { %366 = vrot.lane.b32.xlu0 %v302_v10, %s639_s26  ;;  %357 = vrot.lane.b32.xlu1 %v288_v11, %s641_s28 }
  0x1c   : > { %379 = vrot.lane.b32.xlu0 %v286_v12, %s640_s27  ;;  %346 = vrot.lane.b32.xlu1 %v343_v13, %s642_s29 }
  0x20   : > { %344 = vrot.lane.b32.xlu0 %v342_v14, %s642_s29  ;;  %318 = vrot.lane.b32.xlu1 %v286_v12, %s643_s30 }
  0x24   : > { %316 = vrot.lane.b32.xlu0 %v285_v7, %s643_s30  ;;  %331 = vrot.lane.b32.xlu1 %v328_v15, %s644_s6 }
  0x28   : > { %329 = vrot.lane.b32.xlu0 %v327_v16, %s644_s6  ;;  %293 = vrot.lane.b32.xlu1 %v288_v11, %s645_s7 }
  0x2c   : > { %291 = vrot.lane.b32.xlu0 %v287_v9, %s645_s7  ;;  %305 = vrot.lane.b32.xlu1 %v281_v5, %s646_s9 }
  0x30   : > { %303 = vrot.lane.b32.xlu0 %v302_v10, %s646_s9 }
  0x34   : > { %400 = vperm.xlu0 %623, %v239_v20  }
  0x82   : > { %v369_v21 = vpop.permute.xlu1 %368 }
  0x83   : > { %376 = vst.msk [vmem:[#allocation2 + $0x38] sm:$0xf0] %vm375_vm4, %v369_v21  ;;  %vm307_vm4 = vcmask 130048  }
  0x86   : > { %v378_v22 = vpop.permute.xlu0 %377  ;;  %v356_v23 = vpop.permute.xlu1 %355 }
  0x8a   : > { %v367_v24 = vpop.permute.xlu0 %366  ;;  %v358_v26 = vpop.permute.xlu1 %357 }
  0x8b   : > { %v371_v25 = vsel %vm370_vm5, %v367_v24, %v369_v21  ;;  %v360_v27 = vsel %vm359_vm6, %v356_v23, %v358_v26  ;;  %365 = vst.msk [vmem:[#allocation2 + $0x38] sm:$0xf] %vm364_vm7, %v358_v26  ;;  %vm403_vm5 = vcmask 293888   ;;  %vm507_vm6 = vcmask 0  }
  0x8c   : > { %374 = vst [vmem:[#allocation2 + $0x30] sm:$0xf0] %v371_v25  ;;  %363 = vst [vmem:[#allocation2 + $0x30] sm:$0xf] %v360_v27 }
  0x8e   : > { %v380_v28 = vpop.permute.xlu0 %379  ;;  %v347_v30 = vpop.permute.xlu1 %346 }
  0x8f   : > { %v382_v29 = vsel %vm381_vm8, %v378_v22, %v380_v28  ;;  %387 = vst.msk [vmem:[#allocation2 + $0x48] sm:$0xf] %vm386_vm9, %v380_v28 }
  0x90   : > { %385 = vst [vmem:[#allocation2 + $0x40] sm:$0xf] %v382_v29  ;;  %354 = vst.msk [vmem:[#allocation2 + $0x28] sm:$0xf0] %vm353_vm10, %v347_v30 }
  0x92   : > { %v345_v31 = vpop.permute.xlu0 %344  ;;  %v319_v33 = vpop.permute.xlu1 %318  ;;  %v395_v38 = vld [vmem:[#allocation2 + $0x38] sm:$0xff] }
  0x93   : > { %v349_v32 = vsel %vm348_vm11, %v345_v31, %v347_v30  ;;  %v394_v39 = vld [vmem:[#allocation2 + $0x30] sm:$0xff] }
  0x94   : > { %352 = vst [vmem:[#allocation2 + $0x20] sm:$0xf0] %v349_v32 }
  0x96   : > { %v317_v34 = vpop.permute.xlu0 %316  ;;  %v397_v35 = vld [vmem:[#allocation2 + $0x48] sm:$0xf]  ;;  %v332_v40 = vpop.permute.xlu1 %331 }
  0x97   : > { %325 = vst.msk [vmem:[#allocation2 + $0x10] sm:$0xf] %vm324_vm12, %v317_v34  ;;  %v321_v36 = vsel %vm320_vm13, %v317_v34, %v319_v33  ;;  %598 = vmatprep.subr.msk.mxu0 %vm407_vm14, %v397_v35  ;;  %v396_v37 = vld [vmem:[#allocation2 + $0x40] sm:$0xf]  ;;  %v393_v41 = vld [vmem:[#allocation2 + $0x28] sm:$0xff] }
  0x98   : > { %326 = vst [vmem:[#allocation2 + $0x18] sm:$0xf] %v321_v36  ;;  %599 = vmatpush1.msk.msra.mxu0 %vm407_vm14, %v396_v37 }
  0x99   : > { %438 = vmatprep.subr.mxu0 %v395_v38 }
  0x9a   : > { %439 = vmatpush1.msra.mxu0 %v394_v39  ;;  %v330_v42 = vpop.permute.xlu0 %329  ;;  %v294_v45 = vpop.permute.xlu1 %293 }
  0x9b   : > { %338 = vst.msk [vmem:[#allocation2 + $0x10] sm:$0xf0] %vm337_vm15, %v330_v42  ;;  %v334_v43 = vsel %vm333_vm0, %v330_v42, %v332_v40  ;;  %440 = vmatprep.subr.mxu0 %v393_v41  ;;  %v392_v44 = vld [vmem:[#allocation2 + $0x20] sm:$0xff] }
  0x9c   : > { %339 = vst [vmem:[#allocation2 + $0x18] sm:$0xf0] %v334_v43  ;;  %441 = vmatpush1.msra.mxu0 %v392_v44 }
  0x9e   : > { %v292_v46 = vpop.permute.xlu0 %291  ;;  %v306_v48 = vpop.permute.xlu1 %305 }
  0x9f   : > { %300 = vst.msk [vmem:[#allocation2] sm:$0xf] %vm299_vm1, %v292_v46  ;;  %v296_v47 = vsel %vm295_vm2, %v292_v46, %v294_v45 }
  0xa0   : > { %301 = vst [vmem:[#allocation2 + $0x8] sm:$0xf] %v296_v47 }
  0xa2   : > { %v304_v49 = vpop.permute.xlu0 %303  ;;  %v390_v52 = vld [vmem:[#allocation2 + $0x10] sm:$0xff] }
  0xa3   : > { %312 = vst.msk [vmem:[#allocation2] sm:$0xf0] %vm311_vm3, %v304_v49  ;;  %v308_v50 = vsel %vm307_vm4, %v304_v49, %v306_v48  ;;  %v391_v51 = vld [vmem:[#allocation2 + $0x18] sm:$0xff] }
  0xa4   : > { %313 = vst [vmem:[#allocation2 + $0x8] sm:$0xf0] %v308_v50  ;;  %442 = vmatprep.subr.mxu0 %v391_v51 }
  0xa5   : > { %443 = vmatpush1.msra.mxu0 %v390_v52 }
  0xaa   : > { %v388_v55 = vld [vmem:[#allocation2] sm:$0xff] }
  0xab   : > { %v389_v53 = vld [vmem:[#allocation2 + $0x8] sm:$0xff] }
  0xac   : > { %444 = vmatprep.subr.mxu0 %v389_v53 }
  0xad   : > { %445 = vmatpush1.msra.mxu0 %v388_v55 }
  0xae   : > { %600 = vmatmul.mubr.msk.f32.vlgmr.msra.gmra.mxu0 %vm403_vm5, %v236_v54 }
  0xaf   : > { %v401_v56 = vpop.permute.xlu0 %400 }
 0x16e   : > { %v480_v57 = vpop.f32.mrf.mxu0 }
 0x16f   : > { %v481_v58 = vadd.f32 %v480_v57, %v401_v56 }
 0x170   : > { %v482_v59 = vpop.f32.mrf.mxu0 }
 0x171   : > { %626 = vtanh.f32 %v481_v58  ;;  %v483_v60 = vadd.f32 %v482_v59, %v401_v56 }
 0x173   : > { %628 = vtanh.f32 %v483_v60 }
 0x17e   : > { %v627_v61 = vpop.eup %626 }
 0x17f   : > { %v492_v62 = vmul.f32 %v627_v61, %v627_v61 }
 0x180   : > { %v629_v63 = vpop.eup %628 }
 0x181   : > { %v489_v0 = vcombine.low %v627_v61, %v629_v63  ;;  %v493_v1 = vmul.f32 %v629_v63, %v629_v63  ;;  %v494_v2 = vsel %vm407_vm14, %v492_v62, 0.0 }
 0x183   : > { %491 = vst [vmem:[%s231_s16] sm:$0xff] %v489_v0  ;;  %v495_v3 = vsel %vm407_vm14, %v493_v1, 0.0 }
 0x184   : > { %v496_v4 = vadd.f32 %v495_v3, %v494_v2 }
 0x186   : > { %497 = vadd.xlane.f32.xlu1 %v496_v4 }
 0x20f   : > { %v498_v5 = vpop.xlane.xlu1 %497 }
 0x210   : > { %v499_v6 = vsel %vm407_vm14, %v498_v5, 0.0 }
 0x211   : > { %v500_v7 = vrot.slane %v499_v6, 4 }
 0x213   : > { %v501_v8 = vadd.f32 %v500_v7, %v499_v6 }
 0x215   : > { %v502_v9 = vrot.slane %v501_v8, 2 }
 0x217   : > { %v503_v10 = vadd.f32 %v502_v9, %v501_v8 }
 0x219   : > { %v504_v11 = vrot.slane %v503_v10, 1 }
 0x21b   : > { %v505_v12 = vadd.f32 %v504_v11, %v503_v10 }
 0x21d   : > { %v506_v13 = vmul.f32 0.5, %v505_v12 }
 0x21f   : > { %508 = vst.msk [vmem:[%s234_s19] sm:$0x1] %vm507_vm6, %v506_v13 }
 0x220 PF: > { %s17_s20 = sadd.s32 1, %s636_s20  }
 0x221   : > { %p14_p4 = scmp.ge.s32.totalorder %s17_s20, 4  }
 0x223   :  { %16 = sbr.rel (!%p14_p4) target bundleno = 2 (0x2), region = 78 }

</bundles_post_ra>
